<compile_context>
chip_gen: v7x
topology: tpu7x:2x2x1
jax: 0.10.0
libtpu: 0.0.40
codegen_flags: <defaults>
</compile_context>

<pallas_src>
import functools

import jax
import jax.numpy as jnp
from jax.experimental import pallas as pl
from jax.experimental.pallas import tpu as pltpu


def _two_tower_kernel(ids_ref, wt_ref, b_ref, out_ref, *, boundaries):
    """One batch tile; batch is on the lane (last) axis throughout.

      ids_ref    : (5, TILE_B) int32, row f = ids of field f, pre-offset into [0, V_pad)
      wt_ref     : (2E, V_pad) fused (tower weights @ transposed tables), f32
      b_ref      : (2E, 1)     concat(b_user, b_item) as a column
      out_ref    : (1, TILE_B) scores
      boundaries : static start offsets of fields 1..4 along the fused vocab axis
    """
    v_pad = wt_ref.shape[1]
    tile_b = out_ref.shape[1]

    # target[v, b] = id (already offset) of the field that owns vocab row v.
    # The (iota < static_boundary) masks are loop-invariant constants, so only
    # the 4 selects + 1 equality compare + cast cost VPU work per grid step.
    iota_v = jax.lax.broadcasted_iota(jnp.int32, (v_pad, tile_b), 0)
    b1, b2, b3, b4 = boundaries
    target = ids_ref[4:5, :]                                   # category rows
    target = jnp.where(iota_v < b4, ids_ref[3:4, :], target)   # item rows
    target = jnp.where(iota_v < b3, ids_ref[2:3, :], target)   # device rows
    target = jnp.where(iota_v < b2, ids_ref[1:2, :], target)   # time rows
    target = jnp.where(iota_v < b1, ids_ref[0:1, :], target)   # user rows
    hot = (iota_v == target).astype(jnp.float32)               # (V_pad, TILE_B)

    # Fused gather + concat + both tower linears in ONE MXU matmul, then bias.
    h = jnp.dot(wt_ref[...], hot, preferred_element_type=jnp.float32) + b_ref[...]

    e = h.shape[0] // 2
    # Per-example dot product -> lane-dense (1, TILE_B) row, unmasked store.
    out_ref[...] = jnp.sum(h[:e, :] * h[e:, :], axis=0, keepdims=True)


def two_tower_forward(user_id, time_id, device_id, item_id, category,
                      wt, b_col, offsets):
    """Returns scores of shape (B,) in float32."""
    b = user_id.shape[0]
    e2, v_pad = wt.shape

    # Tile choice: this kernel moves ~24 B/row in and 4 B/row out, so it is
    # per-step-overhead / VPU bound, NOT HBM bound.  Moderate tiles keep the
    # (V_pad, TILE_B) one-hot intermediate small (v5e has one vector-store
    # slot, spills hurt) and give n_tiles >= 2 at big batches so both v7x
    # TensorCores get work.  Sweep {256, 512} per generation if this gets hot.
    if b >= 1024:
        tile_b = 512
    elif b >= 256:
        tile_b = 256
    else:
        tile_b = 128
    n_tiles = pl.cdiv(b, tile_b)
    b_pad = n_tiles * tile_b

    # Explicit VMEM accounting for the resident-table strategy.  v7x has only
    # 64 MiB physical / 32 MiB scoped-default VMEM (half of v5e/v6e).
    #   fused table (single buffer) : 2E * V_pad * 4 B
    #   one-hot intermediate        : V_pad * TILE_B * 4 B
    #   ids / h / out / bias        : small
    vmem_estimate = 4 * (wt.size + b_col.size + v_pad * tile_b
                         + 2 * e2 * tile_b + 2 * 5 * tile_b + 2 * tile_b)
    if vmem_estimate > 24 * 1024 * 1024:
        # TODO(synk): for vocabularies past this point keep the tables in HBM
        # (memory_space=pl.ANY) and gather rows per example with
        # pltpu.make_async_copy instead of the O(V_pad*TILE_B) one-hot matmul.
        # On v6e, first try raising vmem_limit_bytes via pltpu.CompilerParams
        # (128 MiB physical VMEM) before abandoning the resident table.
        raise NotImplementedError(
            f"resident-table strategy needs ~{vmem_estimate / 2**20:.1f} MiB "
            "VMEM; switch to the HBM DMA-gather path for this vocabulary size")

    # Stack the 5 id vectors -> ONE (5, B_pad) int32 operand = one DMA
    # descriptor per grid step instead of five tiny copies; batch along lanes.
    off = jnp.asarray(offsets, jnp.int32).reshape(5, 1)
    ids = jnp.stack([user_id, time_id, device_id, item_id, category]).astype(jnp.int32)
    ids = jnp.pad(ids + off, ((0, 0), (0, b_pad - b)))

    kernel = functools.partial(
        _two_tower_kernel, boundaries=tuple(int(o) for o in offsets[1:]))

    id_spec = pl.BlockSpec((5, tile_b), lambda i: (0, i))
    out_spec = pl.BlockSpec((1, tile_b), lambda i: (0, i))

    def call(single_buffer_constants):
        const_kw = (dict(pipeline_mode=pl.Buffered(1))
                    if single_buffer_constants else {})

        def const_spec(shape):
            # Whole operand, constant block index -> loaded once, VMEM resident
            # across every grid step (never re-DMA'd).
            return pl.BlockSpec(shape, lambda i: (0, 0), **const_kw)

        return pl.pallas_call(
            kernel,
            out_shape=jax.ShapeDtypeStruct((1, b_pad), jnp.float32),
            grid=(n_tiles,),
            in_specs=[id_spec, const_spec(wt.shape), const_spec(b_col.shape)],
            out_specs=out_spec,
            compiler_params=pltpu.CompilerParams(
                dimension_semantics=("parallel",)),
        )(ids, wt, b_col)

    try:
        # A constant block index never re-DMAs, so the default second pipeline
        # buffer is pure wasted VMEM -> request single buffering.
        out = call(True)
    except Exception:  # fallback for JAX without Buffered(1) on constants
        out = call(False)

    return out[0, :b]


class TwoTowerParams:
    """Deterministic synthetic parameters mirroring the PyTorch module."""

    def __init__(self, num_users, num_times, num_devices, num_items,
                 num_categories, embedding_dim=32, key=None):
        if key is None:
            key = jax.random.PRNGKey(0)
        ks = jax.random.split(key, 9)
        E = embedding_dim
        self.E = E
        self.user_emb = jax.random.normal(ks[0], (num_users, E), jnp.float32)
        self.time_emb = jax.random.normal(ks[1], (num_times, E), jnp.float32)
        self.device_emb = jax.random.normal(ks[2], (num_devices, E), jnp.float32)
        self.item_emb = jax.random.normal(ks[3], (num_items, E), jnp.float32)
        self.cat_emb = jax.random.normal(ks[4], (num_categories, E), jnp.float32)
        # Torch layout (out_features, in_features) for the two Linear layers.
        self.w_user = jax.random.normal(ks[5], (E, 3 * E), jnp.float32) * 0.1
        self.b_user = jax.random.normal(ks[6], (E,), jnp.float32) * 0.1
        self.w_item = jax.random.normal(ks[7], (E, 2 * E), jnp.float32) * 0.1
        self.b_item = jax.random.normal(ks[8], (E,), jnp.float32) * 0.1

        # ---- one-time fusion: (tower weights) @ (block-placed tables^T) ----
        # The pipeline is linear, so W @ (T @ hot) == (W @ T) @ hot.  Folding W
        # into the table removes a matmul per grid step, shrinks the resident
        # operand from 5E to 2E rows, and kills the (5E, TILE_B) intermediate.
        tables = (self.user_emb, self.time_emb, self.device_emb,
                  self.item_emb, self.cat_emb)
        v_tot = sum(t.shape[0] for t in tables)
        v_pad = ((v_tot + 127) // 128) * 128       # lane-aligned vocab axis
        offsets, off = [], 0
        tbd_t = jnp.zeros((5 * E, v_pad), jnp.float32)
        for j, t in enumerate(tables):
            offsets.append(off)
            tbd_t = tbd_t.at[j * E:(j + 1) * E, off:off + t.shape[0]].set(t.T)
            off += t.shape[0]
        w_cat = jnp.zeros((2 * E, 5 * E), jnp.float32)
        w_cat = w_cat.at[:E, :3 * E].set(self.w_user)      # user tower block
        w_cat = w_cat.at[E:, 3 * E:].set(self.w_item)      # item tower block
        # One-time host-side fusion at full precision so the kernel does not
        # inherit extra rounding relative to the reference forward.
        self.wt = jnp.dot(w_cat, tbd_t, precision=jax.lax.Precision.HIGHEST)
        # Keep f32 (not bf16): the 0/1 gather is exact either way, but bf16
        # table rounding (~2^-9 rel) is borderline against the 1e-3 tolerance
        # and the post-fusion matmul is tiny, so f32 costs little.
        self.b_col = jnp.concatenate([self.b_user, self.b_item]).reshape(2 * E, 1)
        self.offsets = tuple(offsets)

    def forward(self, user_id, time, device, item_id, category):
        return two_tower_forward(user_id, time, device, item_id, category,
                                 self.wt, self.b_col, self.offsets)

    def forward_ref(self, user_id, time, device, item_id, category):
        # Pure-JAX reference matching the PyTorch module exactly.
        user_vec = jnp.concatenate(
            [self.user_emb[user_id], self.time_emb[time],
             self.device_emb[device]], axis=1)
        item_vec = jnp.concatenate(
            [self.item_emb[item_id], self.cat_emb[category]], axis=1)
        u = user_vec @ self.w_user.T + self.b_user
        it = item_vec @ self.w_item.T + self.b_item
        return jnp.sum(u * it, axis=1)


if __name__ == "__main__":
    num_users, num_times, num_devices = 10, 24, 3
    num_items, num_categories = 20, 5
    embedding_dim = 32

    root = jax.random.PRNGKey(0)
    k_params, k_small, k_big = jax.random.split(root, 3)

    params = TwoTowerParams(num_users, num_times, num_devices, num_items,
                            num_categories, embedding_dim, key=k_params)

    def make_ids(key, batch):
        kid = jax.random.split(key, 5)
        return (jax.random.randint(kid[0], (batch,), 0, num_users),
                jax.random.randint(kid[1], (batch,), 0, num_times),
                jax.random.randint(kid[2], (batch,), 0, num_devices),
                jax.random.randint(kid[3], (batch,), 0, num_items),
                jax.random.randint(kid[4], (batch,), 0, num_categories))

    # Small batch (single padded tile).
    B = 8
    ids_small = make_ids(k_small, B)
    out = jax.block_until_ready(params.forward(*ids_small))
    ref = params.forward_ref(*ids_small)
    assert out.shape == (B,)
    assert jnp.allclose(out, ref, atol=1e-3, rtol=1e-3), (
        f"small-batch mismatch, max abs err {jnp.max(jnp.abs(out - ref))}")

    # Larger batch: exercises the multi-tile parallel grid + padding path.
    B2 = 1000
    ids_big = make_ids(k_big, B2)
    out2 = jax.block_until_ready(params.forward(*ids_big))
    ref2 = params.forward_ref(*ids_big)
    assert out2.shape == (B2,)
    assert jnp.allclose(out2, ref2, atol=1e-3, rtol=1e-3), (
        f"large-batch mismatch, max abs err {jnp.max(jnp.abs(out2 - ref2))}")

    print("KERNEL_OK")
</pallas_src>

<mosaic_0001>
module attributes {stable_mosaic.version = 11 : i64} {
  func.func @_two_tower_kernel(%arg0: i32, %arg1: memref<5x128xi32, #tpu.memory_space<vmem>>, %arg2: memref<64x128xf32, #tpu.memory_space<vmem>>, %arg3: memref<64x1xf32, #tpu.memory_space<vmem>>, %arg4: memref<1x128xf32, #tpu.memory_space<vmem>>) attributes {dimension_semantics = [#tpu.dimension_semantics<parallel>], iteration_bounds = array<i64: 1>, scalar_prefetch = 0 : i64, scratch_operands = 0 : i64, tpu.core_type = #tpu.core_type<tc>, window_params = [{transform_indices = @transform_0, window_bounds = array<i64: 5, 128>}, {pipeline_mode = #tpu.pipeline_mode<synchronous>, transform_indices = @transform_1, window_bounds = array<i64: 64, 128>}, {pipeline_mode = #tpu.pipeline_mode<synchronous>, transform_indices = @transform_2, window_bounds = array<i64: 64, 1>}, {transform_indices = @transform_3, window_bounds = array<i64: 1, 128>}]} {
    %0 = tpu.iota {dimensions = array<i32: 0>} : vector<128x128xi32>
    %c4 = arith.constant 4 : index
    %c0 = arith.constant 0 : index
    %1 = vector.load %arg1[%c4, %c0] : memref<5x128xi32, #tpu.memory_space<vmem>>, vector<1x128xi32>
    %c57_i32 = arith.constant 57 : i32
    %2 = vector.broadcast %c57_i32 : i32 to vector<128x128xi32>
    %3 = arith.cmpi slt, %0, %2 : vector<128x128xi32>
    %c3 = arith.constant 3 : index
    %c0_0 = arith.constant 0 : index
    %4 = vector.load %arg1[%c3, %c0_0] : memref<5x128xi32, #tpu.memory_space<vmem>>, vector<1x128xi32>
    %5 = vector.shape_cast %4 : vector<1x128xi32> to vector<1x128xi32>
    %6 = vector.broadcast %5 : vector<1x128xi32> to vector<128x128xi32>
    %7 = vector.shape_cast %1 : vector<1x128xi32> to vector<1x128xi32>
    %8 = vector.broadcast %7 : vector<1x128xi32> to vector<128x128xi32>
    %9 = arith.select %3, %6, %8 : vector<128x128xi1>, vector<128x128xi32>
    %c37_i32 = arith.constant 37 : i32
    %10 = vector.broadcast %c37_i32 : i32 to vector<128x128xi32>
    %11 = arith.cmpi slt, %0, %10 : vector<128x128xi32>
    %c2 = arith.constant 2 : index
    %c0_1 = arith.constant 0 : index
    %12 = vector.load %arg1[%c2, %c0_1] : memref<5x128xi32, #tpu.memory_space<vmem>>, vector<1x128xi32>
    %13 = vector.shape_cast %12 : vector<1x128xi32> to vector<1x128xi32>
    %14 = vector.broadcast %13 : vector<1x128xi32> to vector<128x128xi32>
    %15 = arith.select %11, %14, %9 : vector<128x128xi1>, vector<128x128xi32>
    %c34_i32 = arith.constant 34 : i32
    %16 = vector.broadcast %c34_i32 : i32 to vector<128x128xi32>
    %17 = arith.cmpi slt, %0, %16 : vector<128x128xi32>
    %c1 = arith.constant 1 : index
    %c0_2 = arith.constant 0 : index
    %18 = vector.load %arg1[%c1, %c0_2] : memref<5x128xi32, #tpu.memory_space<vmem>>, vector<1x128xi32>
    %19 = vector.shape_cast %18 : vector<1x128xi32> to vector<1x128xi32>
    %20 = vector.broadcast %19 : vector<1x128xi32> to vector<128x128xi32>
    %21 = arith.select %17, %20, %15 : vector<128x128xi1>, vector<128x128xi32>
    %c10_i32 = arith.constant 10 : i32
    %22 = vector.broadcast %c10_i32 : i32 to vector<128x128xi32>
    %23 = arith.cmpi slt, %0, %22 : vector<128x128xi32>
    %c0_3 = arith.constant 0 : index
    %c0_4 = arith.constant 0 : index
    %24 = vector.load %arg1[%c0_3, %c0_4] : memref<5x128xi32, #tpu.memory_space<vmem>>, vector<1x128xi32>
    %25 = vector.shape_cast %24 : vector<1x128xi32> to vector<1x128xi32>
    %26 = vector.broadcast %25 : vector<1x128xi32> to vector<128x128xi32>
    %27 = arith.select %23, %26, %21 : vector<128x128xi1>, vector<128x128xi32>
    %28 = arith.cmpi eq, %0, %27 : vector<128x128xi32>
    %29 = arith.extui %28 : vector<128x128xi1> to vector<128x128xi32>
    %30 = arith.sitofp %29 : vector<128x128xi32> to vector<128x128xf32>
    %c0_5 = arith.constant 0 : index
    %c0_6 = arith.constant 0 : index
    %31 = vector.load %arg2[%c0_5, %c0_6] : memref<64x128xf32, #tpu.memory_space<vmem>>, vector<64x128xf32>
    %cst = arith.constant dense<0.000000e+00> : vector<64x128xf32>
    %32 = tpu.matmul %31, %30, %cst {dimension_numbers = #tpu.dot_dimension_numbers<[1], [0], [0], [1], [0, 0, 1, 1], [], []>} : vector<64x128xf32>, vector<128x128xf32>, vector<64x128xf32> -> vector<64x128xf32>
    %c0_7 = arith.constant 0 : index
    %c0_8 = arith.constant 0 : index
    %33 = vector.load %arg3[%c0_7, %c0_8] : memref<64x1xf32, #tpu.memory_space<vmem>>, vector<64x1xf32>
    %34 = vector.broadcast %33 : vector<64x1xf32> to vector<64x128xf32>
    %35 = arith.addf %32, %34 : vector<64x128xf32>
    %36 = vector.extract_strided_slice %35 {offsets = [0, 0], sizes = [32, 128], strides = [1, 1]} : vector<64x128xf32> to vector<32x128xf32>
    %37 = vector.extract_strided_slice %35 {offsets = [32, 0], sizes = [32, 128], strides = [1, 1]} : vector<64x128xf32> to vector<32x128xf32>
    %38 = arith.mulf %36, %37 : vector<32x128xf32>
    %cst_9 = arith.constant dense<0.000000e+00> : vector<128xf32>
    %39 = vector.multi_reduction <add>, %38, %cst_9 [0] : vector<32x128xf32> to vector<128xf32>
    %40 = vector.shape_cast %39 : vector<128xf32> to vector<1x128xf32>
    %c0_10 = arith.constant 0 : index
    %c0_11 = arith.constant 0 : index
    %41 = vector.load %arg4[%c0_10, %c0_11] : memref<1x128xf32, #tpu.memory_space<vmem>>, vector<1x128xf32>
    tpu.vector_store %arg4[%c0_10, %c0_11], %40 {strides = array<i32>} : memref<1x128xf32, #tpu.memory_space<vmem>>, vector<1x128xf32>,
    return
  }
  func.func @transform_0(%arg0: i32) -> (i32, i32) {
    %c0_i32 = arith.constant 0 : i32
    %c0_i32_0 = arith.constant 0 : i32
    return %c0_i32, %arg0 : i32, i32
  }
  func.func @transform_1(%arg0: i32) -> (i32, i32) {
    %c0_i32 = arith.constant 0 : i32
    %c0_i32_0 = arith.constant 0 : i32
    %c0_i32_1 = arith.constant 0 : i32
    return %c0_i32, %c0_i32_0 : i32, i32
  }
  func.func @transform_2(%arg0: i32) -> (i32, i32) {
    %c0_i32 = arith.constant 0 : i32
    %c0_i32_0 = arith.constant 0 : i32
    %c0_i32_1 = arith.constant 0 : i32
    return %c0_i32, %c0_i32_0 : i32, i32
  }
  func.func @transform_3(%arg0: i32) -> (i32, i32) {
    %c0_i32 = arith.constant 0 : i32
    %c0_i32_0 = arith.constant 0 : i32
    return %c0_i32, %arg0 : i32, i32
  }
}

module attributes {stable_mosaic.version = 11 : i64} {
  func.func @_two_tower_kernel(%arg0: i32, %arg1: memref<5x128xi32, #tpu.memory_space<vmem>>, %arg2: memref<64x128xf32, #tpu.memory_space<vmem>>, %arg3: memref<64x1xf32, #tpu.memory_space<vmem>>, %arg4: memref<1x128xf32, #tpu.memory_space<vmem>>) attributes {dimension_semantics = [#tpu.dimension_semantics<parallel>], iteration_bounds = array<i64: 1>, scalar_prefetch = 0 : i64, scratch_operands = 0 : i64, tpu.core_type = #tpu.core_type<tc>, window_params = [{transform_indices = @transform_0, window_bounds = array<i64: 5, 128>}, {pipeline_mode = #tpu.pipeline_mode<synchronous>, transform_indices = @transform_1, window_bounds = array<i64: 64, 128>}, {pipeline_mode = #tpu.pipeline_mode<synchronous>, transform_indices = @transform_2, window_bounds = array<i64: 64, 1>}, {transform_indices = @transform_3, window_bounds = array<i64: 1, 128>}]} {
    %0 = tpu.iota {dimensions = array<i32: 0>} : vector<128x128xi32>
    %c4 = arith.constant 4 : index
    %c0 = arith.constant 0 : index
    %1 = vector.load %arg1[%c4, %c0] : memref<5x128xi32, #tpu.memory_space<vmem>>, vector<1x128xi32>
    %c57_i32 = arith.constant 57 : i32
    %2 = vector.broadcast %c57_i32 : i32 to vector<128x128xi32>
    %3 = arith.cmpi slt, %0, %2 : vector<128x128xi32>
    %c3 = arith.constant 3 : index
    %c0_0 = arith.constant 0 : index
    %4 = vector.load %arg1[%c3, %c0_0] : memref<5x128xi32, #tpu.memory_space<vmem>>, vector<1x128xi32>
    %5 = vector.shape_cast %4 : vector<1x128xi32> to vector<1x128xi32>
    %6 = vector.broadcast %5 : vector<1x128xi32> to vector<128x128xi32>
    %7 = vector.shape_cast %1 : vector<1x128xi32> to vector<1x128xi32>
    %8 = vector.broadcast %7 : vector<1x128xi32> to vector<128x128xi32>
    %9 = arith.select %3, %6, %8 : vector<128x128xi1>, vector<128x128xi32>
    %c37_i32 = arith.constant 37 : i32
    %10 = vector.broadcast %c37_i32 : i32 to vector<128x128xi32>
    %11 = arith.cmpi slt, %0, %10 : vector<128x128xi32>
    %c2 = arith.constant 2 : index
    %c0_1 = arith.constant 0 : index
    %12 = vector.load %arg1[%c2, %c0_1] : memref<5x128xi32, #tpu.memory_space<vmem>>, vector<1x128xi32>
    %13 = vector.shape_cast %12 : vector<1x128xi32> to vector<1x128xi32>
    %14 = vector.broadcast %13 : vector<1x128xi32> to vector<128x128xi32>
    %15 = arith.select %11, %14, %9 : vector<128x128xi1>, vector<128x128xi32>
    %c34_i32 = arith.constant 34 : i32
    %16 = vector.broadcast %c34_i32 : i32 to vector<128x128xi32>
    %17 = arith.cmpi slt, %0, %16 : vector<128x128xi32>
    %c1 = arith.constant 1 : index
    %c0_2 = arith.constant 0 : index
    %18 = vector.load %arg1[%c1, %c0_2] : memref<5x128xi32, #tpu.memory_space<vmem>>, vector<1x128xi32>
    %19 = vector.shape_cast %18 : vector<1x128xi32> to vector<1x128xi32>
    %20 = vector.broadcast %19 : vector<1x128xi32> to vector<128x128xi32>
    %21 = arith.select %17, %20, %15 : vector<128x128xi1>, vector<128x128xi32>
    %c10_i32 = arith.constant 10 : i32
    %22 = vector.broadcast %c10_i32 : i32 to vector<128x128xi32>
    %23 = arith.cmpi slt, %0, %22 : vector<128x128xi32>
    %c0_3 = arith.constant 0 : index
    %c0_4 = arith.constant 0 : index
    %24 = vector.load %arg1[%c0_3, %c0_4] : memref<5x128xi32, #tpu.memory_space<vmem>>, vector<1x128xi32>
    %25 = vector.shape_cast %24 : vector<1x128xi32> to vector<1x128xi32>
    %26 = vector.broadcast %25 : vector<1x128xi32> to vector<128x128xi32>
    %27 = arith.select %23, %26, %21 : vector<128x128xi1>, vector<128x128xi32>
    %28 = arith.cmpi eq, %0, %27 : vector<128x128xi32>
    %29 = arith.extui %28 : vector<128x128xi1> to vector<128x128xi32>
    %30 = arith.sitofp %29 : vector<128x128xi32> to vector<128x128xf32>
    %c0_5 = arith.constant 0 : index
    %c0_6 = arith.constant 0 : index
    %31 = vector.load %arg2[%c0_5, %c0_6] : memref<64x128xf32, #tpu.memory_space<vmem>>, vector<64x128xf32>
    %cst = arith.constant dense<0.000000e+00> : vector<64x128xf32>
    %32 = tpu.matmul %31, %30, %cst {dimension_numbers = #tpu.dot_dimension_numbers<[1], [0], [0], [1], [0, 0, 1, 1], [], []>} : vector<64x128xf32>, vector<128x128xf32>, vector<64x128xf32> -> vector<64x128xf32>
    %c0_7 = arith.constant 0 : index
    %c0_8 = arith.constant 0 : index
    %33 = vector.load %arg3[%c0_7, %c0_8] : memref<64x1xf32, #tpu.memory_space<vmem>>, vector<64x1xf32>
    %34 = vector.broadcast %33 : vector<64x1xf32> to vector<64x128xf32>
    %35 = arith.addf %32, %34 : vector<64x128xf32>
    %36 = vector.extract_strided_slice %35 {offsets = [0, 0], sizes = [32, 128], strides = [1, 1]} : vector<64x128xf32> to vector<32x128xf32>
    %37 = vector.extract_strided_slice %35 {offsets = [32, 0], sizes = [32, 128], strides = [1, 1]} : vector<64x128xf32> to vector<32x128xf32>
    %38 = arith.mulf %36, %37 : vector<32x128xf32>
    %cst_9 = arith.constant dense<0.000000e+00> : vector<128xf32>
    %39 = vector.multi_reduction <add>, %38, %cst_9 [0] : vector<32x128xf32> to vector<128xf32>
    %40 = vector.shape_cast %39 : vector<128xf32> to vector<1x128xf32>
    %c0_10 = arith.constant 0 : index
    %c0_11 = arith.constant 0 : index
    %41 = vector.load %arg4[%c0_10, %c0_11] : memref<1x128xf32, #tpu.memory_space<vmem>>, vector<1x128xf32>
    tpu.vector_store %arg4[%c0_10, %c0_11], %40 {strides = array<i32>} : memref<1x128xf32, #tpu.memory_space<vmem>>, vector<1x128xf32>,
    return
  }
  func.func @transform_0(%arg0: i32) -> (i32, i32) {
    %c0_i32 = arith.constant 0 : i32
    %c0_i32_0 = arith.constant 0 : i32
    return %c0_i32, %arg0 : i32, i32
  }
  func.func @transform_1(%arg0: i32) -> (i32, i32) {
    %c0_i32 = arith.constant 0 : i32
    %c0_i32_0 = arith.constant 0 : i32
    %c0_i32_1 = arith.constant 0 : i32
    return %c0_i32, %c0_i32_0 : i32, i32
  }
  func.func @transform_2(%arg0: i32) -> (i32, i32) {
    %c0_i32 = arith.constant 0 : i32
    %c0_i32_0 = arith.constant 0 : i32
    %c0_i32_1 = arith.constant 0 : i32
    return %c0_i32, %c0_i32_0 : i32, i32
  }
  func.func @transform_3(%arg0: i32) -> (i32, i32) {
    %c0_i32 = arith.constant 0 : i32
    %c0_i32_0 = arith.constant 0 : i32
    return %c0_i32, %arg0 : i32, i32
  }
}

</mosaic_0001>

<bundles_post_ra>
// kernel: tpu_custom_call.1
= control target key start
LH: loop header
LB: loop body
LE: loop exit
PB: predicated region body
PF: predicated region fallthrough
CT: control target
= control target key end

     0   :  { %8 = vsyncpa [#allocation3], 0  ;;  %s848_s0 = inlined_call_operand.hbm [shape: s32[5,128], index: 0, kind: input, shape index: {}]   ;;  %s849_s1 = inlined_call_operand.vmem [shape: f32[64,128], index: 1, kind: input, shape index: {}]   ;;  %s850_s2 = inlined_call_operand.vmem [shape: f32[64,1], index: 2, kind: input, shape index: {}]   ;;  %s851_s3 = inlined_call_operand.hbm [shape: f32[1,128], index: 3, kind: output, shape index: {}]  }
   0x1   :  { %9 = vsyncpa [#allocation4], 0  ;;  %s642_s12 = smov [#allocation2]   ;;  %s594_s16 = scalar_lea.hbm %s848_s0, 128 }
   0x2   :  { %s16_s13 = sshll.u32 %s642_s12, 4  ;;  %p595_p0 = scmp.ne.s32.totalorder %s848_s0, %s594_s16  ;;  %s17_s13 = int_to_ptr.vmem [resolvable:$true] %s16_s13 }
   0x3   :  { %p598_p1 = scmp.lt.u32.totalorder %s594_s16, %s848_s0 }
   0x5   :  { %p600_p2 = pnand %p598_p1, %p595_p0 }
   0x7   :  { %603 = shalt.err (!%p600_p2)
}
   0x8   :  { %s604_s21 = scalar_lea.vmem %s17_s13, 128  ;;  %p609_p4 = scmp.lt.s32.totalorder %s17_s13, %s17_s13 }
   0x9   :  { %p605_p3 = scmp.ne.s32.totalorder %s17_s13, %s604_s21  ;;  %p610_p5 = scmp.lt.s32.totalorder %s604_s21, %s604_s21 }
   0xb   :  { %p611_p6 = por %p610_p5, %p609_p4 }
   0xd   :  { %p612_p7 = pnand %p611_p6, %p605_p3 }
   0xf   :  { %615 = shalt.err (!%p612_p7)
}
  0x10   :  { %19 = dma.hbm_to_vmem [thread:$0]  %s848_s0, 128, %s17_s13, [#allocation3]  }
  0x11   :  { %638 = dma.done.wait [#allocation3], 128  }
  0x12   :  { %639 = vsyncadd [#allocation3], 4294967168  ;;  %v27_v0 = vlaneseq  ;;  %v643_v1 = vmov 0   ;;  %v438_v9 = vld [vmem:[#allocation2 + $0x1] ss:$0 sm:$0xff]  ;;  %v258_v28 = vld [vmem:[%s850_s2 + $0x28] sm:$0xff] }
  0x13   :  { %593 = vset.pattern.permute.xlu1 %v643_v1  ;;  %592 = vset.pattern.permute.xlu0 %v643_v1  ;;  %v439_v10 = vld [vmem:[#allocation2] ss:$0 sm:$0xff]  ;;  %v435_v11 = vld [vmem:[#allocation2 + $0x3] ss:$0 sm:$0xff]  ;;  %v437_v13 = vld [vmem:[#allocation2 + $0x2] ss:$0 sm:$0xff] }
  0x14   :  { %v678_v2 = vshrl.u32 %v27_v0, 7  ;;  %v245_v14 = vld [vmem:[%s849_s1] sm:$0xff]  ;;  %v644_v20 = vmov 1.0|1.0   ;;  %v254_v29 = vld [vmem:[%s850_s2 + $0x8] sm:$0xff]  ;;  %v259_v33 = vld [vmem:[%s850_s2 + $0x30] sm:$0xff] }
  0x15   :  { %v694_v17 = vld [vmem:[#allocation2 + $0x4] ss:$0 sm:$0xff]  ;;  %528 = vmatprep.mubr.f32.mxu0 %v245_v14  ;;  %v255_v34 = vld [vmem:[%s850_s2 + $0x10] sm:$0xff]  ;;  %v260_v38 = vld [vmem:[%s850_s2 + $0x38] sm:$0xff] }
  0x16   :  { %v29_v3 = vadd.s32 8, %v678_v2  ;;  %v30_v4 = vadd.s32 16, %v678_v2  ;;  %v31_v5 = vadd.s32 24, %v678_v2  ;;  %v32_v6 = vadd.s32 32, %v678_v2  ;;  %v249_v18 = vld [vmem:[%s849_s1 + $0x20] sm:$0xff]  ;;  %v256_v39 = vld [vmem:[%s850_s2 + $0x18] sm:$0xff] }
  0x17   :  { %v35_v7 = vadd.s32 56, %v678_v2  ;;  %v33_v8 = vadd.s32 40, %v678_v2  ;;  %vm197_vm3 = vcmp.eq.s32.totalorder %v678_v2, %v439_v10  ;;  %534 = vmatprep.mubr.f32.mxu1 %v249_v18  ;;  %v34_v21 = vadd.s32 48, %v678_v2  ;;  %v257_v23 = vld [vmem:[%s850_s2 + $0x20] sm:$0xff]  ;;  %v246_v42 = vld [vmem:[%s849_s1 + $0x8] sm:$0xff]  ;;  %v247_v44 = vld [vmem:[%s849_s1 + $0x10] sm:$0xff] }
  0x18   :  { %vm161_vm0 = vcmp.lt.s32.totalorder %v29_v3, 10  ;;  %vm90_vm1 = vcmp.lt.s32.totalorder %v32_v6, 37  ;;  %vm127_vm2 = vcmp.lt.s32.totalorder %v32_v6, 34  ;;  %vm199_vm4 = vcmp.eq.s32.totalorder %v30_v4, %v438_v9  ;;  %v253_v24 = vld [vmem:[%s850_s2] sm:$0xff]  ;;  %283 = vperm.xlu1 %593, %v257_v23   ;;  %v250_v43 = vld [vmem:[%s849_s1 + $0x28] sm:$0xff]  ;;  %v251_v45 = vld [vmem:[%s849_s1 + $0x30] sm:$0xff] }
  0x19   :  { %v182_v12 = vsel %vm161_vm0, %v439_v10, %v438_v9  ;;  %vm200_vm5 = vcmp.eq.s32.totalorder %v31_v5, %v438_v9  ;;  %v111_v16 = vsel %vm90_vm1, %v437_v13, %v435_v11  ;;  %vm52_vm8 = vcmp.lt.s32.totalorder %v35_v7, 57  ;;  %263 = vperm.xlu0 %592, %v253_v24   ;;  %v248_v46 = vld [vmem:[%s849_s1 + $0x18] sm:$0xff] }
  0x1a   :  { %vm198_vm6 = vcmp.eq.s32.totalorder %v29_v3, %v182_v12  ;;  %vm690_vm7 = vmpackc.low %vm200_vm5, %vm199_vm4  ;;  %v148_v19 = vsel %vm127_vm2, %v438_v9, %v111_v16  ;;  %vm202_vm11 = vcmp.eq.s32.totalorder %v33_v8, %v435_v11  ;;  %v77_v22 = vsel %vm52_vm8, %v435_v11, %v694_v17  ;;  %v252_v47 = vld [vmem:[%s849_s1 + $0x38] sm:$0xff]  ;;  %s645_s1 = smov [#allocation5]  }
  0x1b   :  { %vm540_vm9 = vmpackc.low %vm198_vm6, %vm197_vm3  ;;  %vm201_vm10 = vcmp.eq.s32.totalorder %v32_v6, %v148_v19  ;;  %vm203_vm13 = vcmp.eq.s32.totalorder %v34_v21, %v435_v11  ;;  %vm204_vm14 = vcmp.eq.s32.totalorder %v35_v7, %v77_v22  ;;  %v36_v26 = vadd.s32 64, %v678_v2  ;;  %s426_s26 = sshll.u32 %s645_s1, 4  ;;  %s427_s26 = int_to_ptr.vmem [resolvable:$true] %s426_s26 }
  0x1c   :  { %541 = vmatprep.subr.msk.bf16.mxu0 %vm540_vm9, %v644_v20  ;;  %572 = vmatprep.subr.msk.bf16.mxu1 %vm540_vm9, %v644_v20  ;;  %vm718_vm12 = vmpackc.low %vm202_vm11, %vm201_vm10  ;;  %v37_v27 = vadd.s32 72, %v678_v2  ;;  %v38_v31 = vadd.s32 80, %v678_v2  ;;  %v39_v32 = vadd.s32 88, %v678_v2  ;;  %v40_v36 = vadd.s32 96, %v678_v2  ;;  %s616_s27 = scalar_lea.vmem %s427_s26, 16  ;;  %s620_s28 = scalar_lea.vmem %s427_s26, 32 }
  0x1d   :  { %543 = vmatpush3.bf16.msk.msra.mxu0 %vm540_vm9, %v644_v20  ;;  %580 = vmatpush3.bf16.msk.msra.mxu1 %vm540_vm9, %v644_v20  ;;  %vm742_vm15 = vmpackc.low %vm204_vm14, %vm203_vm13  ;;  %vm205_vm0 = vcmp.eq.s32.totalorder %v36_v26, %v694_v17  ;;  %v41_v37 = vadd.s32 104, %v678_v2  ;;  %v42_v40 = vadd.s32 112, %v678_v2  ;;  %v43_v41 = vadd.s32 120, %v678_v2  ;;  %p617_p8 = scmp.ne.s32.totalorder %s427_s26, %s616_s27  ;;  %p621_p9 = scmp.lt.s32.totalorder %s427_s26, %s427_s26 }
  0x1e   :  { %545 = vmatprep.subr.msk.bf16.mxu0 %vm690_vm7, %v644_v20  ;;  %573 = vmatprep.subr.msk.bf16.mxu1 %vm690_vm7, %v644_v20  ;;  %vm206_vm1 = vcmp.eq.s32.totalorder %v37_v27, %v694_v17  ;;  %vm207_vm3 = vcmp.eq.s32.totalorder %v38_v31, %v694_v17  ;;  %vm208_vm4 = vcmp.eq.s32.totalorder %v39_v32, %v694_v17  ;;  %p622_p10 = scmp.lt.s32.totalorder %s620_s28, %s616_s27 }
  0x1f   :  { %288 = vperm.xlu1 %593, %v258_v28   ;;  %268 = vperm.xlu0 %592, %v254_v29   ;;  %vm768_vm2 = vmpackc.low %vm206_vm1, %vm205_vm0  ;;  %vm209_vm6 = vcmp.eq.s32.totalorder %v40_v36, %v694_v17  ;;  %vm211_vm9 = vcmp.eq.s32.totalorder %v42_v40, %v694_v17  ;;  %vm212_vm10 = vcmp.eq.s32.totalorder %v43_v41, %v694_v17 }
  0x20   :  { %vm560_vm5 = vmpackc.low %vm208_vm4, %vm207_vm3  ;;  %p623_p11 = por %p622_p10, %p621_p9 }
  0x21   :  { %547 = vmatpush3.bf16.msk.msra.mxu0 %vm690_vm7, %v644_v20  ;;  %581 = vmatpush3.bf16.msk.msra.mxu1 %vm690_vm7, %v644_v20  ;;  %vm210_vm7 = vcmp.eq.s32.totalorder %v41_v37, %v694_v17  ;;  %vm568_vm11 = vmpackc.low %vm212_vm10, %vm211_vm9 }
  0x22   :  { %549 = vmatprep.subr.msk.bf16.mxu0 %vm718_vm12, %v644_v20  ;;  %574 = vmatprep.subr.msk.bf16.mxu1 %vm718_vm12, %v644_v20  ;;  %vm564_vm8 = vmpackc.low %vm210_vm7, %vm209_vm6  ;;  %p624_p12 = pnand %p623_p11, %p617_p8 }
  0x23   :  { %293 = vperm.xlu1 %593, %v259_v33   ;;  %273 = vperm.xlu0 %592, %v255_v34  }
  0x25   :  { %551 = vmatpush3.bf16.msk.msra.mxu0 %vm718_vm12, %v644_v20  ;;  %582 = vmatpush3.bf16.msk.msra.mxu1 %vm718_vm12, %v644_v20 }
  0x26   :  { %553 = vmatprep.subr.msk.bf16.mxu0 %vm742_vm15, %v644_v20  ;;  %575 = vmatprep.subr.msk.bf16.mxu1 %vm742_vm15, %v644_v20 }
  0x27   :  { %298 = vperm.xlu1 %593, %v260_v38   ;;  %278 = vperm.xlu0 %592, %v256_v39  }
  0x29   :  { %555 = vmatpush3.bf16.msk.msra.mxu0 %vm742_vm15, %v644_v20  ;;  %583 = vmatpush3.bf16.msk.msra.mxu1 %vm742_vm15, %v644_v20 }
  0x2a   :  { %557 = vmatprep.subr.msk.bf16.mxu0 %vm768_vm2, %v644_v20  ;;  %576 = vmatprep.subr.msk.bf16.mxu1 %vm768_vm2, %v644_v20 }
  0x2d   :  { %559 = vmatpush3.bf16.msk.msra.mxu0 %vm768_vm2, %v644_v20  ;;  %584 = vmatpush3.bf16.msk.msra.mxu1 %vm768_vm2, %v644_v20 }
  0x2e   :  { %561 = vmatprep.subr.msk.bf16.mxu0 %vm560_vm5, %v644_v20  ;;  %577 = vmatprep.subr.msk.bf16.mxu1 %vm560_vm5, %v644_v20 }
  0x31   :  { %563 = vmatpush3.bf16.msk.msra.mxu0 %vm560_vm5, %v644_v20  ;;  %585 = vmatpush3.bf16.msk.msra.mxu1 %vm560_vm5, %v644_v20 }
  0x32   :  { %565 = vmatprep.subr.msk.bf16.mxu0 %vm564_vm8, %v644_v20  ;;  %578 = vmatprep.subr.msk.bf16.mxu1 %vm564_vm8, %v644_v20 }
  0x35   :  { %567 = vmatpush3.bf16.msk.msra.mxu0 %vm564_vm8, %v644_v20  ;;  %586 = vmatpush3.bf16.msk.msra.mxu1 %vm564_vm8, %v644_v20 }
  0x36   :  { %569 = vmatprep.subr.msk.bf16.mxu0 %vm568_vm11, %v644_v20  ;;  %579 = vmatprep.subr.msk.bf16.mxu1 %vm568_vm11, %v644_v20 }
  0x39   :  { %571 = vmatpush3.bf16.msk.msra.mxu0 %vm568_vm11, %v644_v20  ;;  %587 = vmatpush3.bf16.msk.msra.mxu1 %vm568_vm11, %v644_v20 }
  0x3c   :  { %529 = vmatmul.mubr.f32.vlgmr.msra.gmra.mrb[0].mxu0 %v246_v42  ;;  %535 = vmatmul.mubr.f32.vlgmr.msra.gmra.mrb[0].mxu1 %v250_v43 }
  0x3d   :  { %531 = vmatprep.mubr.f32.mxu0 %v247_v44  ;;  %537 = vmatprep.mubr.f32.mxu1 %v251_v45 }
  0x40   :  { %532 = vmatmul.mubr.f32.gmra.mrb[2].mxu0 %v248_v46  ;;  %538 = vmatmul.mubr.f32.gmra.mrb[2].mxu1 %v252_v47 }
  0x97   :  { %v284_v48 = vpop.permute.xlu1 %283 }
  0x98   :  { %v264_v49 = vpop.permute.xlu0 %263 }
  0x9e   :  { %v289_v50 = vpop.permute.xlu1 %288  ;;  %v269_v51 = vpop.permute.xlu0 %268 }
  0xa2   :  { %v294_v52 = vpop.permute.xlu1 %293  ;;  %v274_v53 = vpop.permute.xlu0 %273 }
  0xa6   :  { %v299_v62 = vpop.permute.xlu1 %298  ;;  %v279_v63 = vpop.permute.xlu0 %278 }
 0x10f   :  { %v530_v54 = vpop.f32.mrb[0].mxu0  ;;  %v536_v55 = vpop.f32.mrb[0].mxu1 }
 0x110   :  { %v373_v56 = vadd.f32 %v530_v54, %v269_v51  ;;  %v393_v57 = vadd.f32 %v536_v55, %v289_v50  ;;  %v367_v58 = vpop.f32.mrb[1].mxu0  ;;  %v387_v59 = vpop.f32.mrb[1].mxu1 }
 0x111   :  { %v368_v60 = vadd.f32 %v367_v58, %v264_v49  ;;  %v388_v61 = vadd.f32 %v387_v59, %v284_v48 }
 0x112   :  { %v407_v0 = vmul.f32 %v393_v57, %v373_v56 }
 0x113   :  { %v406_v1 = vmul.f32 %v388_v61, %v368_v60  ;;  %v533_v2 = vpop.f32.mrb[2].mxu0  ;;  %v539_v3 = vpop.f32.mrb[2].mxu1 }
 0x114   :  { %v383_v4 = vadd.f32 %v533_v2, %v279_v63  ;;  %v403_v5 = vadd.f32 %v539_v3, %v299_v62  ;;  %v377_v6 = vpop.f32.mrb[3].mxu0  ;;  %v397_v7 = vpop.f32.mrb[3].mxu1 }
 0x115   :  { %v410_v8 = vadd.f32 %v407_v0, %v406_v1  ;;  %v378_v9 = vadd.f32 %v377_v6, %v274_v53  ;;  %v398_v10 = vadd.f32 %v397_v7, %v294_v52 }
 0x116   :  { %v409_v11 = vmul.f32 %v403_v5, %v383_v4 }
 0x117   :  { %v408_v12 = vmul.f32 %v398_v10, %v378_v9 }
 0x119   :  { %v411_v13 = vadd.f32 %v410_v8, %v408_v12 }
 0x11b   :  { %v412_v14 = vadd.f32 %v411_v13, %v409_v11 }
 0x11d   :  { %v413_v15 = vrot.slane %v412_v14, 4 }
 0x11f   :  { %v414_v16 = vadd.f32 %v413_v15, %v412_v14 }
 0x121   :  { %v415_v17 = vrot.slane %v414_v16, 2 }
 0x123   :  { %v416_v18 = vadd.f32 %v415_v17, %v414_v16 }
 0x125   :  { %v417_v19 = vrot.slane %v416_v18, 1 }
 0x127   :  { %v418_v20 = vadd.f32 %v417_v19, %v416_v18 }
 0x129   :  { %419 = vst [vmem:[#allocation5] sm:$0x1] %v418_v20 }
 0x12a   :  { %627 = shalt.err (!%p624_p12)
}
 0x12b   :  { %s628_s4 = scalar_lea.hbm %s851_s3, 16 }
 0x12c   :  { %p629_p13 = scmp.ne.s32.totalorder %s851_s3, %s628_s4  ;;  %p632_p0 = scmp.lt.u32.totalorder %s628_s4, %s851_s3 }
 0x12e   :  { %p634_p1 = pnand %p632_p0, %p629_p13 }
 0x130   :  { %637 = shalt.err (!%p634_p1)
}
 0x131   :  { %429 = dma.vmem_to_hbm [thread:$0]  %s427_s26, 16, %s851_s3, [#allocation4]  }
 0x132   :  { %640 = dma.done.wait [#allocation4], 16  }
 0x133   :  { %641 = vsyncadd [#allocation4], 4294967280 }
 0x134   :  { %433 = vsyncpa [#allocation3], 1 }
 0x135   :  { %434 = vsyncpa [#allocation4], 1 }

// kernel: tpu_custom_call.1
= control target key start
LH: loop header
LB: loop body
LE: loop exit
PB: predicated region body
PF: predicated region fallthrough
CT: control target
= control target key end

     0   :  { %8 = vsyncpa [#allocation3], 0  ;;  %s848_s0 = inlined_call_operand.hbm [shape: s32[5,128], index: 0, kind: input, shape index: {}]   ;;  %s849_s1 = inlined_call_operand.vmem [shape: f32[64,128], index: 1, kind: input, shape index: {}]   ;;  %s850_s2 = inlined_call_operand.vmem [shape: f32[64,1], index: 2, kind: input, shape index: {}]   ;;  %s851_s3 = inlined_call_operand.hbm [shape: f32[1,128], index: 3, kind: output, shape index: {}]  }
   0x1   :  { %9 = vsyncpa [#allocation4], 0  ;;  %s642_s12 = smov [#allocation2]   ;;  %s594_s16 = scalar_lea.hbm %s848_s0, 128 }
   0x2   :  { %s16_s13 = sshll.u32 %s642_s12, 4  ;;  %p595_p0 = scmp.ne.s32.totalorder %s848_s0, %s594_s16  ;;  %s17_s13 = int_to_ptr.vmem [resolvable:$true] %s16_s13 }
   0x3   :  { %p598_p1 = scmp.lt.u32.totalorder %s594_s16, %s848_s0 }
   0x5   :  { %p600_p2 = pnand %p598_p1, %p595_p0 }
   0x7   :  { %603 = shalt.err (!%p600_p2)
}
   0x8   :  { %s604_s21 = scalar_lea.vmem %s17_s13, 128  ;;  %p609_p4 = scmp.lt.s32.totalorder %s17_s13, %s17_s13 }
   0x9   :  { %p605_p3 = scmp.ne.s32.totalorder %s17_s13, %s604_s21  ;;  %p610_p5 = scmp.lt.s32.totalorder %s604_s21, %s604_s21 }
   0xb   :  { %p611_p6 = por %p610_p5, %p609_p4 }
   0xd   :  { %p612_p7 = pnand %p611_p6, %p605_p3 }
   0xf   :  { %615 = shalt.err (!%p612_p7)
}
  0x10   :  { %19 = dma.hbm_to_vmem [thread:$0]  %s848_s0, 128, %s17_s13, [#allocation3]  }
  0x11   :  { %638 = dma.done.wait [#allocation3], 128  }
  0x12   :  { %639 = vsyncadd [#allocation3], 4294967168  ;;  %v27_v0 = vlaneseq  ;;  %v643_v1 = vmov 0   ;;  %v438_v9 = vld [vmem:[#allocation2 + $0x1] ss:$0 sm:$0xff]  ;;  %v258_v28 = vld [vmem:[%s850_s2 + $0x28] sm:$0xff] }
  0x13   :  { %593 = vset.pattern.permute.xlu1 %v643_v1  ;;  %592 = vset.pattern.permute.xlu0 %v643_v1  ;;  %v439_v10 = vld [vmem:[#allocation2] ss:$0 sm:$0xff]  ;;  %v435_v11 = vld [vmem:[#allocation2 + $0x3] ss:$0 sm:$0xff]  ;;  %v437_v13 = vld [vmem:[#allocation2 + $0x2] ss:$0 sm:$0xff] }
  0x14   :  { %v678_v2 = vshrl.u32 %v27_v0, 7  ;;  %v245_v14 = vld [vmem:[%s849_s1] sm:$0xff]  ;;  %v644_v20 = vmov 1.0|1.0   ;;  %v254_v29 = vld [vmem:[%s850_s2 + $0x8] sm:$0xff]  ;;  %v259_v33 = vld [vmem:[%s850_s2 + $0x30] sm:$0xff] }
  0x15   :  { %v694_v17 = vld [vmem:[#allocation2 + $0x4] ss:$0 sm:$0xff]  ;;  %528 = vmatprep.mubr.f32.mxu0 %v245_v14  ;;  %v255_v34 = vld [vmem:[%s850_s2 + $0x10] sm:$0xff]  ;;  %v260_v38 = vld [vmem:[%s850_s2 + $0x38] sm:$0xff] }
  0x16   :  { %v29_v3 = vadd.s32 8, %v678_v2  ;;  %v30_v4 = vadd.s32 16, %v678_v2  ;;  %v31_v5 = vadd.s32 24, %v678_v2  ;;  %v32_v6 = vadd.s32 32, %v678_v2  ;;  %v249_v18 = vld [vmem:[%s849_s1 + $0x20] sm:$0xff]  ;;  %v256_v39 = vld [vmem:[%s850_s2 + $0x18] sm:$0xff] }
  0x17   :  { %v35_v7 = vadd.s32 56, %v678_v2  ;;  %v33_v8 = vadd.s32 40, %v678_v2  ;;  %vm197_vm3 = vcmp.eq.s32.totalorder %v678_v2, %v439_v10  ;;  %534 = vmatprep.mubr.f32.mxu1 %v249_v18  ;;  %v34_v21 = vadd.s32 48, %v678_v2  ;;  %v257_v23 = vld [vmem:[%s850_s2 + $0x20] sm:$0xff]  ;;  %v246_v42 = vld [vmem:[%s849_s1 + $0x8] sm:$0xff]  ;;  %v247_v44 = vld [vmem:[%s849_s1 + $0x10] sm:$0xff] }
  0x18   :  { %vm161_vm0 = vcmp.lt.s32.totalorder %v29_v3, 10  ;;  %vm90_vm1 = vcmp.lt.s32.totalorder %v32_v6, 37  ;;  %vm127_vm2 = vcmp.lt.s32.totalorder %v32_v6, 34  ;;  %vm199_vm4 = vcmp.eq.s32.totalorder %v30_v4, %v438_v9  ;;  %v253_v24 = vld [vmem:[%s850_s2] sm:$0xff]  ;;  %283 = vperm.xlu1 %593, %v257_v23   ;;  %v250_v43 = vld [vmem:[%s849_s1 + $0x28] sm:$0xff]  ;;  %v251_v45 = vld [vmem:[%s849_s1 + $0x30] sm:$0xff] }
  0x19   :  { %v182_v12 = vsel %vm161_vm0, %v439_v10, %v438_v9  ;;  %vm200_vm5 = vcmp.eq.s32.totalorder %v31_v5, %v438_v9  ;;  %v111_v16 = vsel %vm90_vm1, %v437_v13, %v435_v11  ;;  %vm52_vm8 = vcmp.lt.s32.totalorder %v35_v7, 57  ;;  %263 = vperm.xlu0 %592, %v253_v24   ;;  %v248_v46 = vld [vmem:[%s849_s1 + $0x18] sm:$0xff] }
  0x1a   :  { %vm198_vm6 = vcmp.eq.s32.totalorder %v29_v3, %v182_v12  ;;  %vm690_vm7 = vmpackc.low %vm200_vm5, %vm199_vm4  ;;  %v148_v19 = vsel %vm127_vm2, %v438_v9, %v111_v16  ;;  %vm202_vm11 = vcmp.eq.s32.totalorder %v33_v8, %v435_v11  ;;  %v77_v22 = vsel %vm52_vm8, %v435_v11, %v694_v17  ;;  %v252_v47 = vld [vmem:[%s849_s1 + $0x38] sm:$0xff]  ;;  %s645_s1 = smov [#allocation5]  }
  0x1b   :  { %vm540_vm9 = vmpackc.low %vm198_vm6, %vm197_vm3  ;;  %vm201_vm10 = vcmp.eq.s32.totalorder %v32_v6, %v148_v19  ;;  %vm203_vm13 = vcmp.eq.s32.totalorder %v34_v21, %v435_v11  ;;  %vm204_vm14 = vcmp.eq.s32.totalorder %v35_v7, %v77_v22  ;;  %v36_v26 = vadd.s32 64, %v678_v2  ;;  %s426_s26 = sshll.u32 %s645_s1, 4  ;;  %s427_s26 = int_to_ptr.vmem [resolvable:$true] %s426_s26 }
  0x1c   :  { %541 = vmatprep.subr.msk.bf16.mxu0 %vm540_vm9, %v644_v20  ;;  %572 = vmatprep.subr.msk.bf16.mxu1 %vm540_vm9, %v644_v20  ;;  %vm718_vm12 = vmpackc.low %vm202_vm11, %vm201_vm10  ;;  %v37_v27 = vadd.s32 72, %v678_v2  ;;  %v38_v31 = vadd.s32 80, %v678_v2  ;;  %v39_v32 = vadd.s32 88, %v678_v2  ;;  %v40_v36 = vadd.s32 96, %v678_v2  ;;  %s616_s27 = scalar_lea.vmem %s427_s26, 16  ;;  %s620_s28 = scalar_lea.vmem %s427_s26, 32 }
  0x1d   :  { %543 = vmatpush3.bf16.msk.msra.mxu0 %vm540_vm9, %v644_v20  ;;  %580 = vmatpush3.bf16.msk.msra.mxu1 %vm540_vm9, %v644_v20  ;;  %vm742_vm15 = vmpackc.low %vm204_vm14, %vm203_vm13  ;;  %vm205_vm0 = vcmp.eq.s32.totalorder %v36_v26, %v694_v17  ;;  %v41_v37 = vadd.s32 104, %v678_v2  ;;  %v42_v40 = vadd.s32 112, %v678_v2  ;;  %v43_v41 = vadd.s32 120, %v678_v2  ;;  %p617_p8 = scmp.ne.s32.totalorder %s427_s26, %s616_s27  ;;  %p621_p9 = scmp.lt.s32.totalorder %s427_s26, %s427_s26 }
  0x1e   :  { %545 = vmatprep.subr.msk.bf16.mxu0 %vm690_vm7, %v644_v20  ;;  %573 = vmatprep.subr.msk.bf16.mxu1 %vm690_vm7, %v644_v20  ;;  %vm206_vm1 = vcmp.eq.s32.totalorder %v37_v27, %v694_v17  ;;  %vm207_vm3 = vcmp.eq.s32.totalorder %v38_v31, %v694_v17  ;;  %vm208_vm4 = vcmp.eq.s32.totalorder %v39_v32, %v694_v17  ;;  %p622_p10 = scmp.lt.s32.totalorder %s620_s28, %s616_s27 }
  0x1f   :  { %288 = vperm.xlu1 %593, %v258_v28   ;;  %268 = vperm.xlu0 %592, %v254_v29   ;;  %vm768_vm2 = vmpackc.low %vm206_vm1, %vm205_vm0  ;;  %vm209_vm6 = vcmp.eq.s32.totalorder %v40_v36, %v694_v17  ;;  %vm211_vm9 = vcmp.eq.s32.totalorder %v42_v40, %v694_v17  ;;  %vm212_vm10 = vcmp.eq.s32.totalorder %v43_v41, %v694_v17 }
  0x20   :  { %vm560_vm5 = vmpackc.low %vm208_vm4, %vm207_vm3  ;;  %p623_p11 = por %p622_p10, %p621_p9 }
  0x21   :  { %547 = vmatpush3.bf16.msk.msra.mxu0 %vm690_vm7, %v644_v20  ;;  %581 = vmatpush3.bf16.msk.msra.mxu1 %vm690_vm7, %v644_v20  ;;  %vm210_vm7 = vcmp.eq.s32.totalorder %v41_v37, %v694_v17  ;;  %vm568_vm11 = vmpackc.low %vm212_vm10, %vm211_vm9 }
  0x22   :  { %549 = vmatprep.subr.msk.bf16.mxu0 %vm718_vm12, %v644_v20  ;;  %574 = vmatprep.subr.msk.bf16.mxu1 %vm718_vm12, %v644_v20  ;;  %vm564_vm8 = vmpackc.low %vm210_vm7, %vm209_vm6  ;;  %p624_p12 = pnand %p623_p11, %p617_p8 }
  0x23   :  { %293 = vperm.xlu1 %593, %v259_v33   ;;  %273 = vperm.xlu0 %592, %v255_v34  }
  0x25   :  { %551 = vmatpush3.bf16.msk.msra.mxu0 %vm718_vm12, %v644_v20  ;;  %582 = vmatpush3.bf16.msk.msra.mxu1 %vm718_vm12, %v644_v20 }
  0x26   :  { %553 = vmatprep.subr.msk.bf16.mxu0 %vm742_vm15, %v644_v20  ;;  %575 = vmatprep.subr.msk.bf16.mxu1 %vm742_vm15, %v644_v20 }
  0x27   :  { %298 = vperm.xlu1 %593, %v260_v38   ;;  %278 = vperm.xlu0 %592, %v256_v39  }
  0x29   :  { %555 = vmatpush3.bf16.msk.msra.mxu0 %vm742_vm15, %v644_v20  ;;  %583 = vmatpush3.bf16.msk.msra.mxu1 %vm742_vm15, %v644_v20 }
  0x2a   :  { %557 = vmatprep.subr.msk.bf16.mxu0 %vm768_vm2, %v644_v20  ;;  %576 = vmatprep.subr.msk.bf16.mxu1 %vm768_vm2, %v644_v20 }
  0x2d   :  { %559 = vmatpush3.bf16.msk.msra.mxu0 %vm768_vm2, %v644_v20  ;;  %584 = vmatpush3.bf16.msk.msra.mxu1 %vm768_vm2, %v644_v20 }
  0x2e   :  { %561 = vmatprep.subr.msk.bf16.mxu0 %vm560_vm5, %v644_v20  ;;  %577 = vmatprep.subr.msk.bf16.mxu1 %vm560_vm5, %v644_v20 }
  0x31   :  { %563 = vmatpush3.bf16.msk.msra.mxu0 %vm560_vm5, %v644_v20  ;;  %585 = vmatpush3.bf16.msk.msra.mxu1 %vm560_vm5, %v644_v20 }
  0x32   :  { %565 = vmatprep.subr.msk.bf16.mxu0 %vm564_vm8, %v644_v20  ;;  %578 = vmatprep.subr.msk.bf16.mxu1 %vm564_vm8, %v644_v20 }
  0x35   :  { %567 = vmatpush3.bf16.msk.msra.mxu0 %vm564_vm8, %v644_v20  ;;  %586 = vmatpush3.bf16.msk.msra.mxu1 %vm564_vm8, %v644_v20 }
  0x36   :  { %569 = vmatprep.subr.msk.bf16.mxu0 %vm568_vm11, %v644_v20  ;;  %579 = vmatprep.subr.msk.bf16.mxu1 %vm568_vm11, %v644_v20 }
  0x39   :  { %571 = vmatpush3.bf16.msk.msra.mxu0 %vm568_vm11, %v644_v20  ;;  %587 = vmatpush3.bf16.msk.msra.mxu1 %vm568_vm11, %v644_v20 }
  0x3c   :  { %529 = vmatmul.mubr.f32.vlgmr.msra.gmra.mrb[0].mxu0 %v246_v42  ;;  %535 = vmatmul.mubr.f32.vlgmr.msra.gmra.mrb[0].mxu1 %v250_v43 }
  0x3d   :  { %531 = vmatprep.mubr.f32.mxu0 %v247_v44  ;;  %537 = vmatprep.mubr.f32.mxu1 %v251_v45 }
  0x40   :  { %532 = vmatmul.mubr.f32.gmra.mrb[2].mxu0 %v248_v46  ;;  %538 = vmatmul.mubr.f32.gmra.mrb[2].mxu1 %v252_v47 }
  0x97   :  { %v284_v48 = vpop.permute.xlu1 %283 }
  0x98   :  { %v264_v49 = vpop.permute.xlu0 %263 }
  0x9e   :  { %v289_v50 = vpop.permute.xlu1 %288  ;;  %v269_v51 = vpop.permute.xlu0 %268 }
  0xa2   :  { %v294_v52 = vpop.permute.xlu1 %293  ;;  %v274_v53 = vpop.permute.xlu0 %273 }
  0xa6   :  { %v299_v62 = vpop.permute.xlu1 %298  ;;  %v279_v63 = vpop.permute.xlu0 %278 }
 0x10f   :  { %v530_v54 = vpop.f32.mrb[0].mxu0  ;;  %v536_v55 = vpop.f32.mrb[0].mxu1 }
 0x110   :  { %v373_v56 = vadd.f32 %v530_v54, %v269_v51  ;;  %v393_v57 = vadd.f32 %v536_v55, %v289_v50  ;;  %v367_v58 = vpop.f32.mrb[1].mxu0  ;;  %v387_v59 = vpop.f32.mrb[1].mxu1 }
 0x111   :  { %v368_v60 = vadd.f32 %v367_v58, %v264_v49  ;;  %v388_v61 = vadd.f32 %v387_v59, %v284_v48 }
 0x112   :  { %v407_v0 = vmul.f32 %v393_v57, %v373_v56 }
 0x113   :  { %v406_v1 = vmul.f32 %v388_v61, %v368_v60  ;;  %v533_v2 = vpop.f32.mrb[2].mxu0  ;;  %v539_v3 = vpop.f32.mrb[2].mxu1 }
 0x114   :  { %v383_v4 = vadd.f32 %v533_v2, %v279_v63  ;;  %v403_v5 = vadd.f32 %v539_v3, %v299_v62  ;;  %v377_v6 = vpop.f32.mrb[3].mxu0  ;;  %v397_v7 = vpop.f32.mrb[3].mxu1 }
 0x115   :  { %v410_v8 = vadd.f32 %v407_v0, %v406_v1  ;;  %v378_v9 = vadd.f32 %v377_v6, %v274_v53  ;;  %v398_v10 = vadd.f32 %v397_v7, %v294_v52 }
 0x116   :  { %v409_v11 = vmul.f32 %v403_v5, %v383_v4 }
 0x117   :  { %v408_v12 = vmul.f32 %v398_v10, %v378_v9 }
 0x119   :  { %v411_v13 = vadd.f32 %v410_v8, %v408_v12 }
 0x11b   :  { %v412_v14 = vadd.f32 %v411_v13, %v409_v11 }
 0x11d   :  { %v413_v15 = vrot.slane %v412_v14, 4 }
 0x11f   :  { %v414_v16 = vadd.f32 %v413_v15, %v412_v14 }
 0x121   :  { %v415_v17 = vrot.slane %v414_v16, 2 }
 0x123   :  { %v416_v18 = vadd.f32 %v415_v17, %v414_v16 }
 0x125   :  { %v417_v19 = vrot.slane %v416_v18, 1 }
 0x127   :  { %v418_v20 = vadd.f32 %v417_v19, %v416_v18 }
 0x129   :  { %419 = vst [vmem:[#allocation5] sm:$0x1] %v418_v20 }
 0x12a   :  { %627 = shalt.err (!%p624_p12)
}
 0x12b   :  { %s628_s4 = scalar_lea.hbm %s851_s3, 16 }
 0x12c   :  { %p629_p13 = scmp.ne.s32.totalorder %s851_s3, %s628_s4  ;;  %p632_p0 = scmp.lt.u32.totalorder %s628_s4, %s851_s3 }
 0x12e   :  { %p634_p1 = pnand %p632_p0, %p629_p13 }
 0x130   :  { %637 = shalt.err (!%p634_p1)
}
 0x131   :  { %429 = dma.vmem_to_hbm [thread:$0]  %s427_s26, 16, %s851_s3, [#allocation4]  }
 0x132   :  { %640 = dma.done.wait [#allocation4], 16  }
 0x133   :  { %641 = vsyncadd [#allocation4], 4294967280 }
 0x134   :  { %433 = vsyncpa [#allocation3], 1 }
 0x135   :  { %434 = vsyncpa [#allocation4], 1 }

</bundles_post_ra>
